<compile_context>
chip_gen: v7x
topology: tpu7x:2x2x1
jax: 0.10.0
libtpu: 0.0.40
codegen_flags: <defaults>
</compile_context>

<pallas_src>
import functools

import jax
import jax.numpy as jnp
from jax.experimental import pallas as pl
from jax.experimental.pallas import tpu as pltpu


def _round_up(x, m):
    return (x + m - 1) // m * m


# Stay well under the smallest scoped-VMEM default (16 MiB on v5e is raised to
# 32 MiB via vmem_limit_bytes below); leaves >=1.6x headroom everywhere.
_VMEM_BUDGET = 20 * 1024 * 1024


def _default_tile_cap():
    # v7x has 64 MiB VMEM per TensorCore -> cap tiles at 1024 lanes; the
    # 128 MiB generations (v5e/v6e) can take 2048-lane tiles.
    try:
        vmem = pltpu.get_tpu_info().vmem_capacity_bytes
    except Exception:  # pragma: no cover - emulator / older jax
        vmem = 128 * 1024 * 1024
    return 1024 if vmem <= 64 * 1024 * 1024 else 2048


def _vmem_estimate(tile, C, Hid, x_bytes, w_bytes):
    io = 2 * 2 * C * tile * x_bytes        # double-buffered x tile + out tile
    hid = Hid * tile * 4                   # f32 hidden activation (Hid, tile)
    wts = 2 * 2 * Hid * C * w_bytes        # two resident weight matrices, 2 bufs
    vec = 2 * 4 * (Hid + C) * 4            # scale / bias vectors
    return io + hid + wts + vec


def _pick_tile(HW_pad, N, C, Hid, x_bytes, w_bytes, tile_cap):
    """Largest lane-tile that (a) divides HW_pad exactly -> zero extra padding,
    (b) fits the VMEM budget, (c) leaves >=2 grid points for megacore (v7x)."""
    n128 = HW_pad // 128
    divisors = [d for d in range(1, n128 + 1) if n128 % d == 0]
    cands = sorted((128 * d for d in divisors), reverse=True)
    fits = [t for t in cands
            if t <= tile_cap
            and _vmem_estimate(t, C, Hid, x_bytes, w_bytes) <= _VMEM_BUDGET]
    if not fits:
        fits = [128]
    tile = fits[0]
    # v7x has 2 TensorCores: make sure the parallel grid has >= 2 points.
    if N * (HW_pad // tile) < 2:
        for t in fits:
            if HW_pad // t >= 2:
                tile = t
                break
    return tile


def ffn_kernel(x_ref, w1_ref, s1_ref, b1_ref, w2_ref, s2_ref, b2_ref, o_ref):
    # x_ref:  (1, C, T)   lane-dense tile of pixels (T = tile of H*W)
    # w1_ref: (Hid, C)    raw pw1 weight (bf16 or f32)
    # s1_ref: (Hid, 1)    BN1 scale (f32),  b1_ref: (Hid, 1) BN1 bias (f32)
    # w2_ref: (C, Hid)    raw pw2 weight
    # s2_ref: (C, 1)      BN2 scale (f32),  b2_ref: (C, 1)  BN2 bias (f32)
    # o_ref:  (1, C, T)   same dtype as the input activations
    x = x_ref[0]                                            # (C, T)
    if x.dtype != w1_ref.dtype:                             # no-op when already matched
        x = x.astype(w1_ref.dtype)
    h = jnp.dot(w1_ref[...], x,
                preferred_element_type=jnp.float32)         # (Hid, T) f32 on MXU
    h = jnp.maximum(h * s1_ref[...] + b1_ref[...], 0.0)     # BN + ReLU in f32 (VPU)
    y = jnp.dot(w2_ref[...], h.astype(w2_ref.dtype),
                preferred_element_type=jnp.float32)         # (C, T) f32 on MXU
    o_ref[0] = (y * s2_ref[...] + b2_ref[...]).astype(o_ref.dtype)


def fold_bn_params(params, *, matmul_dtype=jnp.bfloat16):
    """Eval-mode BN as per-channel f32 scale/bias; conv weights kept raw (only
    dtype-cast) so bf16 rounding never amplifies a large g/sqrt(var) scale."""
    w1, g1, beta1, mu1, var1, w2, g2, beta2, mu2, var2, eps = params
    s1 = g1 / jnp.sqrt(var1 + eps)                               # (Hid,)
    s2 = g2 / jnp.sqrt(var2 + eps)                               # (C,)
    w1_eff = w1[:, :, 0, 0].astype(matmul_dtype)                 # (Hid, C)
    s1_eff = s1[:, None].astype(jnp.float32)                     # (Hid, 1)
    b1_eff = (beta1 - s1 * mu1)[:, None].astype(jnp.float32)     # (Hid, 1)
    w2_eff = w2[:, :, 0, 0].astype(matmul_dtype)                 # (C, Hid)
    s2_eff = s2[:, None].astype(jnp.float32)                     # (C, 1)
    b2_eff = (beta2 - s2 * mu2)[:, None].astype(jnp.float32)     # (C, 1)
    return w1_eff, s1_eff, b1_eff, w2_eff, s2_eff, b2_eff


@functools.partial(jax.jit, static_argnames=("tile_cap",))
def ffn_forward(x_nchw, folded, *, tile_cap=None):
    """x_nchw: (N, C, H, W). folded: output of fold_bn_params. Returns NCHW
    with the same dtype as the input (bf16 in -> bf16 out)."""
    w1, s1, b1, w2, s2, b2 = folded
    N, C, H, W = x_nchw.shape
    Hid = w1.shape[0]
    HW = H * W
    HW_pad = _round_up(HW, 128)

    if tile_cap is None:
        tile_cap = _default_tile_cap()
    x_bytes = jnp.dtype(x_nchw.dtype).itemsize
    w_bytes = jnp.dtype(w1.dtype).itemsize
    tile = _pick_tile(HW_pad, N, C, Hid, x_bytes, w_bytes, tile_cap)

    x_flat = x_nchw.reshape(N, C, HW)              # pure reshape, no transpose
    if HW_pad != HW:
        # Only <=127 padded lanes; triggers only when H*W % 128 != 0.
        x_flat = jnp.pad(x_flat, ((0, 0), (0, 0), (0, HW_pad - HW)))

    grid = (N, HW_pad // tile)

    out = pl.pallas_call(
        ffn_kernel,
        out_shape=jax.ShapeDtypeStruct((N, C, HW_pad), x_nchw.dtype),
        grid_spec=pltpu.PrefetchScalarGridSpec(
            num_scalar_prefetch=0,
            grid=grid,
            in_specs=[
                pl.BlockSpec((1, C, tile), lambda n, j: (n, 0, j)),
                pl.BlockSpec((Hid, C), lambda n, j: (0, 0)),
                pl.BlockSpec((Hid, 1), lambda n, j: (0, 0)),
                pl.BlockSpec((Hid, 1), lambda n, j: (0, 0)),
                pl.BlockSpec((C, Hid), lambda n, j: (0, 0)),
                pl.BlockSpec((C, 1), lambda n, j: (0, 0)),
                pl.BlockSpec((C, 1), lambda n, j: (0, 0)),
            ],
            out_specs=pl.BlockSpec((1, C, tile), lambda n, j: (n, 0, j)),
        ),
        compiler_params=pltpu.CompilerParams(
            dimension_semantics=("parallel", "parallel"),
            vmem_limit_bytes=32 * 1024 * 1024),
    )(x_flat, w1, s1, b1, w2, s2, b2)

    if HW_pad != HW:
        out = out[:, :, :HW]
    return out.reshape(N, C, H, W)


def init_params(key, in_features, hidden_features):
    k1, k2 = jax.random.split(key)
    # Conv2d weights: (out, in, 1, 1), bias=False (Conv2d_BN).
    w1 = jax.random.uniform(k1, (hidden_features, in_features, 1, 1),
                            jnp.float32, -1.0, 1.0) / jnp.sqrt(in_features)
    w2 = jax.random.uniform(k2, (in_features, hidden_features, 1, 1),
                            jnp.float32, -1.0, 1.0) / jnp.sqrt(hidden_features)
    # BatchNorm: weight=1, bias=0 (module init), fresh running stats.
    g1 = jnp.ones((hidden_features,), jnp.float32)
    beta1 = jnp.zeros((hidden_features,), jnp.float32)
    mu1 = jnp.zeros((hidden_features,), jnp.float32)
    var1 = jnp.ones((hidden_features,), jnp.float32)
    g2 = jnp.ones((in_features,), jnp.float32)
    beta2 = jnp.zeros((in_features,), jnp.float32)
    mu2 = jnp.zeros((in_features,), jnp.float32)
    var2 = jnp.ones((in_features,), jnp.float32)
    eps = jnp.float32(1e-5)
    return (w1, g1, beta1, mu1, var1, w2, g2, beta2, mu2, var2, eps)


def ffn_reference(x_nchw, params):
    """Pure-JAX f32 reference of the same (eval-mode BN) forward."""
    w1, g1, beta1, mu1, var1, w2, g2, beta2, mu2, var2, eps = params

    def conv_bn(x, w, g, b, mu, var):
        y = jnp.einsum('nchw,oc->nohw', x, w[:, :, 0, 0])
        s = g / jnp.sqrt(var + eps)
        return y * s[None, :, None, None] + (b - s * mu)[None, :, None, None]

    h = jax.nn.relu(conv_bn(x_nchw, w1, g1, beta1, mu1, var1))
    return conv_bn(h, w2, g2, beta2, mu2, var2)


if __name__ == "__main__":
    key = jax.random.PRNGKey(0)
    kx, kx2, kp = jax.random.split(key, 3)

    N, C, H, W = 2, 4, 16, 16
    hidden = 32

    x = jax.random.normal(kx, (N, C, H, W), dtype=jnp.float32)
    params = init_params(kp, C, hidden)
    ref = ffn_reference(x, params)

    # f32-matmul path: tight correctness check against the pure-JAX reference.
    folded_f32 = fold_bn_params(params, matmul_dtype=jnp.float32)
    out_f32 = jax.block_until_ready(ffn_forward(x, folded_f32))
    assert out_f32.shape == (N, C, H, W)
    assert jnp.allclose(out_f32, ref, atol=1e-4, rtol=1e-4), "f32 mismatch"

    # bf16-weight path (MXU-native production default); BN scale stays f32.
    folded_bf16 = fold_bn_params(params, matmul_dtype=jnp.bfloat16)
    out_bf16 = jax.block_until_ready(ffn_forward(x, folded_bf16))
    assert out_bf16.shape == (N, C, H, W)
    assert jnp.allclose(out_bf16, ref, atol=5e-2, rtol=5e-2), "bf16-w mismatch"

    # bf16 activations in -> bf16 out (no wrapper casts, halves x/y traffic).
    x_bf16 = x.astype(jnp.bfloat16)
    out_act_bf16 = jax.block_until_ready(ffn_forward(x_bf16, folded_bf16))
    assert out_act_bf16.shape == (N, C, H, W)
    assert out_act_bf16.dtype == jnp.bfloat16
    assert jnp.allclose(out_act_bf16.astype(jnp.float32), ref,
                        atol=2.5e-1, rtol=1e-1), "bf16-act mismatch"

    # Non-128-multiple spatial + N=1: exercises minimal padding (to 128, not to
    # the tile) and the >=2-grid-point tile split for v7x megacore.
    x_odd = jax.random.normal(kx2, (1, C, 12, 12), dtype=jnp.float32)
    ref_odd = ffn_reference(x_odd, params)
    out_odd = jax.block_until_ready(ffn_forward(x_odd, folded_f32))
    assert out_odd.shape == (1, C, 12, 12)
    assert jnp.allclose(out_odd, ref_odd, atol=1e-4, rtol=1e-4), "odd-HW mismatch"

    print("KERNEL_OK")
</pallas_src>

<mosaic_0001>
module attributes {stable_mosaic.version = 11 : i64} {
  func.func @ffn_kernel(%arg0: i32, %arg1: i32, %arg2: memref<1x4x256xf32, #tpu.memory_space<vmem>>, %arg3: memref<32x4xf32, #tpu.memory_space<vmem>>, %arg4: memref<32x1xf32, #tpu.memory_space<vmem>>, %arg5: memref<32x1xf32, #tpu.memory_space<vmem>>, %arg6: memref<4x32xf32, #tpu.memory_space<vmem>>, %arg7: memref<4x1xf32, #tpu.memory_space<vmem>>, %arg8: memref<4x1xf32, #tpu.memory_space<vmem>>, %arg9: memref<1x4x256xf32, #tpu.memory_space<vmem>>) attributes {dimension_semantics = [#tpu.dimension_semantics<parallel>, #tpu.dimension_semantics<parallel>], iteration_bounds = array<i64: 2, 1>, scalar_prefetch = 0 : i64, scratch_operands = 0 : i64, tpu.core_type = #tpu.core_type<tc>, window_params = [{transform_indices = @transform_0, window_bounds = array<i64: 1, 4, 256>}, {pipeline_mode = #tpu.pipeline_mode<synchronous>, transform_indices = @transform_1, window_bounds = array<i64: 32, 4>}, {pipeline_mode = #tpu.pipeline_mode<synchronous>, transform_indices = @transform_2, window_bounds = array<i64: 32, 1>}, {pipeline_mode = #tpu.pipeline_mode<synchronous>, transform_indices = @transform_3, window_bounds = array<i64: 32, 1>}, {pipeline_mode = #tpu.pipeline_mode<synchronous>, transform_indices = @transform_4, window_bounds = array<i64: 4, 32>}, {pipeline_mode = #tpu.pipeline_mode<synchronous>, transform_indices = @transform_5, window_bounds = array<i64: 4, 1>}, {pipeline_mode = #tpu.pipeline_mode<synchronous>, transform_indices = @transform_6, window_bounds = array<i64: 4, 1>}, {transform_indices = @transform_7, window_bounds = array<i64: 1, 4, 256>}]} {
    %c0 = arith.constant 0 : index
    %c0_0 = arith.constant 0 : index
    %c0_1 = arith.constant 0 : index
    %0 = vector.load %arg2[%c0, %c0_0, %c0_1] : memref<1x4x256xf32, #tpu.memory_space<vmem>>, vector<1x4x256xf32>
    %1 = vector.shape_cast %0 : vector<1x4x256xf32> to vector<4x256xf32>
    %c0_2 = arith.constant 0 : index
    %c0_3 = arith.constant 0 : index
    %2 = vector.load %arg3[%c0_2, %c0_3] : memref<32x4xf32, #tpu.memory_space<vmem>>, vector<32x4xf32>
    %cst = arith.constant dense<0.000000e+00> : vector<32x256xf32>
    %3 = tpu.matmul %2, %1, %cst {dimension_numbers = #tpu.dot_dimension_numbers<[1], [0], [0], [1], [0, 0, 1, 1], [], []>} : vector<32x4xf32>, vector<4x256xf32>, vector<32x256xf32> -> vector<32x256xf32>
    %c0_4 = arith.constant 0 : index
    %c0_5 = arith.constant 0 : index
    %4 = vector.load %arg4[%c0_4, %c0_5] : memref<32x1xf32, #tpu.memory_space<vmem>>, vector<32x1xf32>
    %5 = vector.broadcast %4 : vector<32x1xf32> to vector<32x256xf32>
    %6 = arith.mulf %3, %5 : vector<32x256xf32>
    %c0_6 = arith.constant 0 : index
    %c0_7 = arith.constant 0 : index
    %7 = vector.load %arg5[%c0_6, %c0_7] : memref<32x1xf32, #tpu.memory_space<vmem>>, vector<32x1xf32>
    %8 = vector.broadcast %7 : vector<32x1xf32> to vector<32x256xf32>
    %9 = arith.addf %6, %8 : vector<32x256xf32>
    %cst_8 = arith.constant 0.000000e+00 : f32
    %10 = vector.broadcast %cst_8 : f32 to vector<32x256xf32>
    %11 = arith.maximumf %9, %10 : vector<32x256xf32>
    %c0_9 = arith.constant 0 : index
    %c0_10 = arith.constant 0 : index
    %12 = vector.load %arg6[%c0_9, %c0_10] : memref<4x32xf32, #tpu.memory_space<vmem>>, vector<4x32xf32>
    %cst_11 = arith.constant dense<0.000000e+00> : vector<4x256xf32>
    %13 = tpu.matmul %12, %11, %cst_11 {dimension_numbers = #tpu.dot_dimension_numbers<[1], [0], [0], [1], [0, 0, 1, 1], [], []>} : vector<4x32xf32>, vector<32x256xf32>, vector<4x256xf32> -> vector<4x256xf32>
    %c0_12 = arith.constant 0 : index
    %c0_13 = arith.constant 0 : index
    %14 = vector.load %arg7[%c0_12, %c0_13] : memref<4x1xf32, #tpu.memory_space<vmem>>, vector<4x1xf32>
    %15 = vector.broadcast %14 : vector<4x1xf32> to vector<4x256xf32>
    %16 = arith.mulf %13, %15 : vector<4x256xf32>
    %c0_14 = arith.constant 0 : index
    %c0_15 = arith.constant 0 : index
    %17 = vector.load %arg8[%c0_14, %c0_15] : memref<4x1xf32, #tpu.memory_space<vmem>>, vector<4x1xf32>
    %18 = vector.broadcast %17 : vector<4x1xf32> to vector<4x256xf32>
    %19 = arith.addf %16, %18 : vector<4x256xf32>
    %c0_16 = arith.constant 0 : index
    %c0_17 = arith.constant 0 : index
    %c0_18 = arith.constant 0 : index
    %20 = vector.load %arg9[%c0_16, %c0_17, %c0_18] : memref<1x4x256xf32, #tpu.memory_space<vmem>>, vector<1x4x256xf32>
    %21 = vector.shape_cast %20 : vector<1x4x256xf32> to vector<4x256xf32>
    %22 = vector.shape_cast %19 : vector<4x256xf32> to vector<1x4x256xf32>
    tpu.vector_store %arg9[%c0_16, %c0_17, %c0_18], %22 {strides = array<i32>} : memref<1x4x256xf32, #tpu.memory_space<vmem>>, vector<1x4x256xf32>,
    return
  }
  func.func @transform_0(%arg0: i32, %arg1: i32) -> (i32, i32, i32) {
    %c0_i32 = arith.constant 0 : i32
    %c0_i32_0 = arith.constant 0 : i32
    return %arg0, %c0_i32, %arg1 : i32, i32, i32
  }
  func.func @transform_1(%arg0: i32, %arg1: i32) -> (i32, i32) {
    %c0_i32 = arith.constant 0 : i32
    %c0_i32_0 = arith.constant 0 : i32
    %c0_i32_1 = arith.constant 0 : i32
    return %c0_i32, %c0_i32_0 : i32, i32
  }
  func.func @transform_2(%arg0: i32, %arg1: i32) -> (i32, i32) {
    %c0_i32 = arith.constant 0 : i32
    %c0_i32_0 = arith.constant 0 : i32
    %c0_i32_1 = arith.constant 0 : i32
    return %c0_i32, %c0_i32_0 : i32, i32
  }
  func.func @transform_3(%arg0: i32, %arg1: i32) -> (i32, i32) {
    %c0_i32 = arith.constant 0 : i32
    %c0_i32_0 = arith.constant 0 : i32
    %c0_i32_1 = arith.constant 0 : i32
    return %c0_i32, %c0_i32_0 : i32, i32
  }
  func.func @transform_4(%arg0: i32, %arg1: i32) -> (i32, i32) {
    %c0_i32 = arith.constant 0 : i32
    %c0_i32_0 = arith.constant 0 : i32
    %c0_i32_1 = arith.constant 0 : i32
    return %c0_i32, %c0_i32_0 : i32, i32
  }
  func.func @transform_5(%arg0: i32, %arg1: i32) -> (i32, i32) {
    %c0_i32 = arith.constant 0 : i32
    %c0_i32_0 = arith.constant 0 : i32
    %c0_i32_1 = arith.constant 0 : i32
    return %c0_i32, %c0_i32_0 : i32, i32
  }
  func.func @transform_6(%arg0: i32, %arg1: i32) -> (i32, i32) {
    %c0_i32 = arith.constant 0 : i32
    %c0_i32_0 = arith.constant 0 : i32
    %c0_i32_1 = arith.constant 0 : i32
    return %c0_i32, %c0_i32_0 : i32, i32
  }
  func.func @transform_7(%arg0: i32, %arg1: i32) -> (i32, i32, i32) {
    %c0_i32 = arith.constant 0 : i32
    %c0_i32_0 = arith.constant 0 : i32
    return %arg0, %c0_i32, %arg1 : i32, i32, i32
  }
}

</mosaic_0001>

<bundles_post_ra>
// kernel: ffn_forward.1
= control target key start
LH: loop header
LB: loop body
LE: loop exit
PB: predicated region body
PF: predicated region fallthrough
CT: control target
= control target key end

     0   :  { %s811_s24 = smov 0   ;;  %s813_s25 = smov 0   ;;  %s900_s0 = inlined_call_operand.vmem [shape: f32[2,4,256], index: 0, kind: input, shape index: {}]   ;;  %s901_s1 = inlined_call_operand.vmem [shape: f32[32,4], index: 1, kind: input, shape index: {}]   ;;  %s902_s2 = inlined_call_operand.vmem [shape: f32[32,1], index: 2, kind: input, shape index: {}]   ;;  %s903_s3 = inlined_call_operand.vmem [shape: f32[32,1], index: 3, kind: input, shape index: {}]   ;;  %s904_s4 = inlined_call_operand.vmem [shape: f32[4,32], index: 4, kind: input, shape index: {}]   ;;  %s905_s5 = inlined_call_operand.vmem [shape: f32[4,1], index: 5, kind: input, shape index: {}]   ;;  %s906_s6 = inlined_call_operand.vmem [shape: f32[4,1], index: 6, kind: input, shape index: {}]   ;;  %s907_s7 = inlined_call_operand.vmem [shape: f32[2,4,256], index: 7, kind: output, shape index: {}]  }
   0x1   :  { %s815_s26 = smov 0  }
   0x2 LB: > { %s29_s27 = sadd.s32 1, %s763_s25  ;;  %p692_p0 = scmp.ge.s32.totalorder %s767_s26, 1  ;;  %s767_s26 = sphi %s815_s26, %s17_s26   ;;  %s763_s25 = sphi %s813_s25, %s909_s25   ;;  %s759_s24 = sphi %s811_s24, %s908_s24  }
   0x3   : > { %p31_p1 = scmp.ge.s32.totalorder %s29_s27, 2  ;;  %p258_p2 = scmp.lt.s32.totalorder %s767_s26, 3 }
   0x5   : > { %s911_s27 = smov (%p31_p1, %s29_s27), 0  ;;  %p259_p3 = pnand %p692_p0, %p258_p2 }
   0x6   : > { %p299_p4 = scmp.lt.s32.totalorder (!%p259_p3), %s759_s24, 1  ;;  %v769_v0 = vmov (!%p259_p3), 0.0   ;;  %v464_v1 = vld [vmem:[%s903_s3] sm:$0xff] (!%p259_p3)  ;;  %v770_v2 = vmov (!%p259_p3), 0   ;;  %v465_v4 = vld [vmem:[%s903_s3 + $0x8] sm:$0xff] (!%p259_p3)  ;;  %vm338_vm0 = vcmask (!%p259_p3), 1043456  }
   0x7   : > { %262 = sbr.rel (%p259_p3) target bundleno = 479 (0x1df), region = 48  ;;  %407 = vmatprep.mubr.f32.mxu0 (!%p259_p3), %v769_v0  ;;  %573 = vmatprep.mubr.f32.mxu1 (!%p259_p3), %v769_v0  ;;  %v432_v3 = vld [vmem:[%s902_s2] sm:$0xff] (!%p259_p3)  ;;  %v433_v5 = vld [vmem:[%s902_s2 + $0x8] sm:$0xff] (!%p259_p3)  ;;  %vm325_vm1 = vcmask (!%p259_p3), 31744   ;;  %v435_v9 = vld [vmem:[%s902_s2 + $0x18] sm:$0xff] (!%p259_p3)  ;;  %vm505_vm2 = vcmask (!%p259_p3), 261120  }
   0x8   : > { %743 = vset.pattern.permute.xlu1 (!%p259_p3), %v770_v2  ;;  %742 = vset.pattern.permute.xlu0 (!%p259_p3), %v770_v2  ;;  %v319_v8 = vld [vmem:[%s901_s1] sm:$0xff] (!%p259_p3)  ;;  %v434_v10 = vld [vmem:[%s902_s2 + $0x10] sm:$0xff] (!%p259_p3)  ;;  %v320_v11 = vld [vmem:[%s901_s1 + $0x8] sm:$0xff] (!%p259_p3) }
   0x9   : > { %470 = vperm.xlu1 (!%p259_p3), %743, %v464_v1   ;;  %438 = vperm.xlu0 (!%p259_p3), %742, %v432_v3   ;;  %v467_v12 = vld [vmem:[%s903_s3 + $0x18] sm:$0xff] (!%p259_p3)  ;;  %v466_v13 = vld [vmem:[%s903_s3 + $0x10] sm:$0xff] (!%p259_p3)  ;;  %v588_v15 = vld [vmem:[%s906_s6] sm:$0xf] (!%p259_p3) }
   0xa   : > { %v321_v14 = vld [vmem:[%s901_s1 + $0x10] sm:$0xff] (!%p259_p3)  ;;  %v580_v16 = vld [vmem:[%s905_s5] sm:$0xf] (!%p259_p3)  ;;  %v322_v17 = vld [vmem:[%s901_s1 + $0x18] sm:$0xff] (!%p259_p3) }
   0xb   : > { %v504_v62 = vld [vmem:[%s904_s4] sm:$0xf] (!%p259_p3) }
   0xd   : > { %475 = vperm.xlu1 (!%p259_p3), %743, %v465_v4   ;;  %443 = vperm.xlu0 (!%p259_p3), %742, %v433_v5  }
   0xe   : > { %s913_s24 = smov (!%p299_p4, %s759_s24), 1 }
   0xf   : > { %s706_s9 = sshll.u32 %s913_s24, 3 }
  0x10   : > { %s306_s16 = scalar_lea.vmem %s900_s0, %s706_s9  ;;  %s316_s23 = scalar_lea.vmem %s907_s7, %s706_s9 }
  0x11   : > { %v318_v6 = vld [vmem:[%s306_s16] sm:$0xff]  ;;  %453 = vperm.xlu1 %743, %v435_v9   ;;  %448 = vperm.xlu0 %742, %v434_v10  }
  0x12   : > { %v324_v7 = vcombine.high %v318_v6, %v318_v6 }
  0x14   : > { %697 = vmatprep.subr.msk.mxu0 %vm338_vm0, %v324_v7 }
  0x15   : > { %698 = vmatpush1.msk.msra.mxu0 %vm338_vm0, %v318_v6  ;;  %485 = vperm.xlu1 %743, %v467_v12  }
  0x16   : > { %699 = vmatmul.mubr.msk.f32.vlgmr.msra.gmra.mrb[0].mxu0 %vm325_vm1, %v319_v8  ;;  %480 = vperm.xlu0 %742, %v466_v13  }
  0x17   : > { %413 = vmatprep.mubr.f32.mxu0 %v769_v0 }
  0x19   : > { %591 = vperm.xlu1 %743, %v588_v15  }
  0x1a   : > { %700 = vmatmul.mubr.msk.f32.gmra.mrb[2].mxu0 %vm325_vm1, %v320_v11  ;;  %583 = vperm.xlu0 %742, %v580_v16  }
  0x1b   : > { %419 = vmatprep.mubr.f32.mxu0 %v769_v0 }
  0x1e   : > { %701 = vmatmul.mubr.msk.f32.gmra.mrb[4].mxu0 %vm325_vm1, %v321_v14 }
  0x1f   : > { %425 = vmatprep.mubr.f32.mxu0 %v769_v0 }
  0x22   : > { %702 = vmatmul.mubr.msk.f32.gmra.mrb[6].mxu0 %vm325_vm1, %v322_v17 }
  0x88   : > { %v439_v18 = vpop.permute.xlu0 %438  ;;  %v471_v19 = vpop.permute.xlu1 %470 }
  0x8c   : > { %v444_v20 = vpop.permute.xlu0 %443  ;;  %v476_v24 = vpop.permute.xlu1 %475 }
  0x90   : > { %v449_v30 = vpop.permute.xlu0 %448  ;;  %v454_v34 = vpop.permute.xlu1 %453 }
  0x94   : > { %v486_v51 = vpop.permute.xlu1 %485 }
  0x95   : > { %v481_v45 = vpop.permute.xlu0 %480 }
  0x98   : > { %v592_v3 = vpop.permute.xlu1 %591 }
  0x99   : > { %v584_v63 = vpop.permute.xlu0 %583 }
  0xe9   : > { %v409_v21 = vpop.f32.mrb[0].mxu0 }
  0xea   : > { %v456_v22 = vmul.f32 %v439_v18, %v409_v21  ;;  %v411_v23 = vpop.f32.mrb[1].mxu0 }
  0xeb   : > { %v457_v25 = vmul.f32 %v439_v18, %v411_v23 }
  0xec   : > { %v488_v27 = vadd.f32 %v471_v19, %v456_v22 }
  0xed   : > { %v415_v26 = vpop.f32.mrb[2].mxu0  ;;  %v489_v32 = vadd.f32 %v471_v19, %v457_v25 }
  0xee   : > { %v458_v28 = vmul.f32 %v444_v20, %v415_v26  ;;  %v417_v29 = vpop.f32.mrb[3].mxu0  ;;  %v496_v37 = vmax.f32 %v488_v27, 0.0 }
  0xef   : > { %v459_v31 = vmul.f32 %v444_v20, %v417_v29  ;;  %v497_v42 = vmax.f32 %v489_v32, 0.0 }
  0xf0   : > { %v490_v33 = vadd.f32 %v476_v24, %v458_v28 }
  0xf1   : > { %v421_v35 = vpop.f32.mrb[4].mxu0  ;;  %v491_v36 = vadd.f32 %v476_v24, %v459_v31 }
  0xf2   : > { %v498_v38 = vmax.f32 %v490_v33, 0.0  ;;  %v460_v39 = vmul.f32 %v449_v30, %v421_v35  ;;  %v423_v40 = vpop.f32.mrb[5].mxu0 }
  0xf3   : > { %v461_v41 = vmul.f32 %v449_v30, %v423_v40  ;;  %v499_v43 = vmax.f32 %v491_v36, 0.0 }
  0xf4   : > { %v710_v44 = vpack.c.bf16 %v498_v38, %v496_v37  ;;  %v492_v48 = vadd.f32 %v481_v45, %v460_v39 }
  0xf5   : > { %v427_v46 = vpop.f32.mrb[6].mxu0  ;;  %v708_v47 = vpack.c.bf16 %v499_v43, %v497_v42  ;;  %v493_v52 = vadd.f32 %v481_v45, %v461_v41 }
  0xf6   : > { %v462_v49 = vmul.f32 %v454_v34, %v427_v46  ;;  %v429_v50 = vpop.f32.mrb[7].mxu0  ;;  %v500_v56 = vmax.f32 %v492_v48, 0.0 }
  0xf7   : > { %v463_v53 = vmul.f32 %v454_v34, %v429_v50  ;;  %709 = vmatprep.subr.bf16.mxu1 %v708_v47  ;;  %v501_v58 = vmax.f32 %v493_v52, 0.0 }
  0xf8   : > { %v494_v54 = vadd.f32 %v486_v51, %v462_v49  ;;  %711 = vmatpush1.bf16.msra.mxu1 %v710_v44 }
  0xf9   : > { %v495_v55 = vadd.f32 %v486_v51, %v463_v53 }
  0xfa   : > { %v502_v57 = vmax.f32 %v494_v54, 0.0 }
  0xfb   : > { %v503_v59 = vmax.f32 %v495_v55, 0.0 }
  0xfc   : > { %v714_v60 = vpack.c.bf16 %v502_v57, %v500_v56 }
  0xfd   : > { %v712_v61 = vpack.c.bf16 %v503_v59, %v501_v58 }
  0xff   : > { %713 = vmatprep.subr.bf16.mxu1 %v712_v61 }
 0x100   : > { %715 = vmatpush1.bf16.msra.mxu1 %v714_v60 }
 0x103   : > { %703 = vmatmul.mubr.msk.f32.vlgmr.msra.gmra.mrb[0].mxu1 %vm505_vm2, %v504_v62 }
 0x1d6   : > { %v575_v0 = vpop.f32.mrb[0].mxu1 }
 0x1d7   : > { %v586_v1 = vmul.f32 %v584_v63, %v575_v0  ;;  %v577_v2 = vpop.f32.mrb[1].mxu1 }
 0x1d8   : > { %v587_v4 = vmul.f32 %v584_v63, %v577_v2 }
 0x1d9   : > { %v594_v5 = vadd.f32 %v592_v3, %v586_v1 }
 0x1da   : > { %v595_v6 = vadd.f32 %v592_v3, %v587_v4 }
 0x1dc   : > { %v598_v7 = vcombine.low %v594_v5, %v595_v6 }
 0x1de   : > { %600 = vst [vmem:[%s316_s23] sm:$0xff] %v598_v7 }
 0x1df PF: > { %s17_s26 = sadd.s32 1, %s767_s26   ;;  %s908_s24 = smov %s763_s25 }
 0x1e0   : > { %p14_p5 = scmp.ge.s32.totalorder %s17_s26, 4   ;;  %s909_s25 = smov %s911_s27 }
 0x1e2   :  { %16 = sbr.rel (!%p14_p5) target bundleno = 2 (0x2), region = 78 }

</bundles_post_ra>
